<compile_context>
chip_gen: v7x
topology: tpu7x:2x2x1
jax: 0.10.0
libtpu: 0.0.40
codegen_flags: <defaults>
</compile_context>

<pallas_src>
import jax
import jax.numpy as jnp
from jax.experimental import pallas as pl
from jax.experimental.pallas import tpu as pltpu


# ----------------------------- Pallas kernel ------------------------------ #

def _make_gru_gcn_kernel(n_layer, hidden):
    """Build a kernel that runs all `n_layer` GRU-GCN cells in one invocation."""
    H = hidden

    def kernel(*refs):
        a_ref, x0_ref, h_ref = refs[0], refs[1], refs[2]
        wx3_refs = refs[3: 3 + n_layer]                    # (Fin_i, 3H) bf16
        wh3_refs = refs[3 + n_layer: 3 + 2 * n_layer]      # (H, 3H)     bf16
        whh_refs = refs[3 + 2 * n_layer: 3 + 3 * n_layer]  # (H, H)      bf16
        b_refs = refs[3 + 3 * n_layer: 3 + 4 * n_layer]    # (1, 3H)     f32
        out_ref = refs[3 + 4 * n_layer]                    # (N, n_layer*H) f32

        a = a_ref[...]                 # (N, N)   bf16 normalized adjacency
        x = x0_ref[...]                # (N, Fin) bf16 layer-0 input

        outs = []
        for i in range(n_layer):       # static loop: n_layer is small & known
            h_bf = h_ref[i]            # (N, H) bf16
            h_f32 = h_bf.astype(jnp.float32)

            # Fused pre-activations: [xWz+hWz | xWr+hWr | xWh].
            # Summed in f32, rounded to bf16 once before the A_hat matmul.
            pre = (jnp.dot(x, wx3_refs[i][...],
                           preferred_element_type=jnp.float32)
                   + jnp.dot(h_bf, wh3_refs[i][...],
                             preferred_element_type=jnp.float32))    # (N, 3H)

            # Single A_hat aggregation over the 3H-wide slab.
            s = jnp.dot(a, pre.astype(jnp.bfloat16),
                        preferred_element_type=jnp.float32)          # (N, 3H)

            b = b_refs[i][...]                                       # (1, 3H)

            # Gate math kept in f32 (v5e has no bf16 VPU/EUP path).
            z = jax.nn.sigmoid(s[:, 0:H] + b[:, 0:H])
            r = jax.nn.sigmoid(s[:, H:2 * H] + b[:, H:2 * H])

            # Candidate branch (depends on r): (r*h) @ Whh, then A_hat @ (.)
            hc = jnp.dot((r * h_f32).astype(jnp.bfloat16), whh_refs[i][...],
                         preferred_element_type=jnp.float32)         # (N, H)
            cand = jnp.dot(a, hc.astype(jnp.bfloat16),
                           preferred_element_type=jnp.float32)       # (N, H)
            h_tilde = jnp.tanh(s[:, 2 * H:3 * H] + cand + b[:, 2 * H:3 * H])

            h_new = z * h_f32 + (1.0 - z) * h_tilde                  # (N, H) f32
            outs.append(h_new)

            # Carry to the next layer as the MXU (bf16) input.
            x = h_new.astype(jnp.bfloat16)

        # One full-width store instead of n_layer sub-128-lane masked stores.
        out_ref[...] = jnp.concatenate(outs, axis=1)

    return kernel


def _vmem_limit_bytes(num_nodes, input_size, hidden, n_layer):
    """Padded ((8|16),128)-tile resident footprint + generous headroom."""
    def padded(rows, cols, itemsize):
        sub = 8 * (4 // itemsize)                  # f32 -> 8, bf16 -> 16
        rp = -(-rows // sub) * sub
        cp = -(-cols // 128) * 128
        return rp * cp * itemsize

    total = 0
    total += padded(num_nodes, num_nodes, 2)                   # A_hat
    total += padded(num_nodes, input_size, 2)                  # x0
    total += n_layer * padded(num_nodes, hidden, 2)            # h (per layer)
    for i in range(n_layer):
        fin = input_size if i == 0 else hidden
        total += padded(fin, 3 * hidden, 2)                    # Wx3
        total += padded(hidden, 3 * hidden, 2)                 # Wh3
        total += padded(hidden, hidden, 2)                     # Whh
        total += padded(1, 3 * hidden, 4)                      # bias row
    total += padded(num_nodes, n_layer * hidden, 4)            # output slab
    # 2x headroom for live temporaries + 8 MiB for compiler internal scratch.
    return int(min(2 * total + (8 << 20), 100 << 20))


def graph_gru_gcn_forward(inp, edge_index, h, packed_params):
    """Mirror of graph_gru_gcn.forward: returns (out, h_out)."""
    n_layer, num_nodes, hidden = h.shape
    input_size = inp.shape[1]
    a_hat = build_normalized_adjacency(edge_index, num_nodes)

    # bf16 at the kernel boundary (halves DMA bytes, native MXU dtype);
    # accumulation and gate math stay f32 inside the kernel.
    a_bf = a_hat.astype(jnp.bfloat16)
    x_bf = inp.astype(jnp.bfloat16)
    h_bf = h.astype(jnp.bfloat16)

    wx3_l = [p[0] for p in packed_params]
    wh3_l = [p[1] for p in packed_params]
    whh_l = [p[2] for p in packed_params]
    b_l = [p[3] for p in packed_params]

    operands = (a_bf, x_bf, h_bf, *wx3_l, *wh3_l, *whh_l, *b_l)

    out_slab = pl.pallas_call(
        _make_gru_gcn_kernel(n_layer, hidden),
        out_shape=jax.ShapeDtypeStruct((num_nodes, n_layer * hidden),
                                       jnp.float32),
        # No grid: the whole problem is VMEM-resident for one invocation
        # (A_hat loaded exactly once, no double-buffering overhead).
        compiler_params=pltpu.CompilerParams(
            vmem_limit_bytes=_vmem_limit_bytes(num_nodes, input_size,
                                               hidden, n_layer)),
    )(*operands)

    h_out = out_slab.reshape(num_nodes, n_layer, hidden).transpose(1, 0, 2)
    return h_out, h_out


# ------------------------------ JAX glue ---------------------------------- #

def build_normalized_adjacency(edge_index, num_nodes):
    """Dense A_hat = D^{-1/2} (A + I) D^{-1/2}, matching PyG GCNConv defaults."""
    src, dst = edge_index  # message flows src -> dst
    a = jnp.zeros((num_nodes, num_nodes), jnp.float32)
    a = a.at[dst, src].add(1.0)
    a = a + jnp.eye(num_nodes, dtype=jnp.float32)        # add self loops
    deg = jnp.sum(a, axis=1)
    dinv = jnp.where(deg > 0, 1.0 / jnp.sqrt(deg), 0.0)
    return a * dinv[:, None] * dinv[None, :]


def glorot(key, shape):
    fan_in, fan_out = shape
    lim = jnp.sqrt(6.0 / (fan_in + fan_out))
    return jax.random.uniform(key, shape, jnp.float32, -lim, lim)


def init_graph_gru_gcn_params(key, input_size, hidden_size, n_layer):
    """Per-layer raw params: 6 weights + 6 biases (as in the PyTorch module)."""
    params = []
    for i in range(n_layer):
        in_dim = input_size if i == 0 else hidden_size
        keys = jax.random.split(key, 13)
        key = keys[0]
        wxz = glorot(keys[1], (in_dim, hidden_size))
        whz = glorot(keys[2], (hidden_size, hidden_size))
        wxr = glorot(keys[3], (in_dim, hidden_size))
        whr = glorot(keys[4], (hidden_size, hidden_size))
        wxh = glorot(keys[5], (in_dim, hidden_size))
        whh = glorot(keys[6], (hidden_size, hidden_size))
        biases = [jax.random.uniform(keys[7 + j], (1, hidden_size), jnp.float32,
                                     -0.1, 0.1) for j in range(6)]
        params.append((wxz, whz, wxr, whr, wxh, whh, *biases))
    return params


def pack_params(raw_params):
    """Host-side fusion: stack gate weights so x+h adds happen before A_hat.

    Wx3 = [Wxz | Wxr | Wxh]  (Fin, 3H)
    Wh3 = [Whz | Whr |  0 ]  (H,   3H)   (zero block: h~ uses r*h via Whh)
    b   = [bxz+bhz | bxr+bhr | bxh+bhh]  (1, 3H)
    """
    packed = []
    for (wxz, whz, wxr, whr, wxh, whh,
         bxz, bhz, bxr, bhr, bxh, bhh) in raw_params:
        wx3 = jnp.concatenate([wxz, wxr, wxh], axis=1).astype(jnp.bfloat16)
        wh3 = jnp.concatenate([whz, whr, jnp.zeros_like(whh)],
                              axis=1).astype(jnp.bfloat16)
        whh_b = whh.astype(jnp.bfloat16)
        b = jnp.concatenate([bxz + bhz, bxr + bhr, bxh + bhh],
                            axis=1).astype(jnp.float32)          # (1, 3H)
        packed.append((wx3, wh3, whh_b, b))
    return packed


def reference_forward(a, x0, h, raw_params):
    """Pure-JAX reference modelling the kernel's bf16 rounding points exactly."""
    H = h.shape[-1]

    def rd(v):  # bf16 round-trip (what the kernel sees / produces at each cast)
        return v.astype(jnp.bfloat16).astype(jnp.float32)

    def mm(p, q):  # true f32 matmul of bf16-valued operands
        return jnp.dot(p, q, precision=jax.lax.Precision.HIGHEST)

    a = rd(a)
    x = rd(x0)
    h = rd(h)
    outs = []
    for i, p in enumerate(raw_params):
        (wxz, whz, wxr, whr, wxh, whh, bxz, bhz, bxr, bhr, bxh, bhh) = p
        wx3 = rd(jnp.concatenate([wxz, wxr, wxh], axis=1))
        wh3 = rd(jnp.concatenate([whz, whr, jnp.zeros_like(whh)], axis=1))
        whh_r = rd(whh)
        bz, br, bh = bxz + bhz, bxr + bhr, bxh + bhh

        hi = h[i]
        pre = rd(mm(x, wx3) + mm(hi, wh3))          # single bf16 round of pre
        s = mm(a, pre)                              # (N, 3H)
        z = jax.nn.sigmoid(s[:, 0:H] + bz)
        r = jax.nn.sigmoid(s[:, H:2 * H] + br)
        hc = rd(mm(rd(r * hi), whh_r))
        cand = mm(a, hc)
        h_tilde = jnp.tanh(s[:, 2 * H:3 * H] + cand + bh)
        hn = z * hi + (1.0 - z) * h_tilde
        outs.append(hn)
        x = rd(hn)                                  # bf16 layer-to-layer carry
    return jnp.stack(outs, axis=0)


# ------------------------------- driver ------------------------------------ #

if __name__ == "__main__":
    key = jax.random.PRNGKey(0)
    k_x, k_h, k_p = jax.random.split(key, 3)

    num_nodes = 64
    input_size = 16
    hidden_size = 32
    n_layer = 2

    # Synthetic bidirectional ring graph (+ a few chords).
    idx = jnp.arange(num_nodes)
    src = jnp.concatenate([idx, (idx + 1) % num_nodes,
                           idx, (idx + 5) % num_nodes])
    dst = jnp.concatenate([(idx + 1) % num_nodes, idx,
                           (idx + 5) % num_nodes, idx])
    edge_index = jnp.stack([src, dst], axis=0).astype(jnp.int32)

    inp = jax.random.normal(k_x, (num_nodes, input_size), jnp.float32)
    h0 = jax.random.normal(k_h, (n_layer, num_nodes, hidden_size), jnp.float32)

    raw_params = init_graph_gru_gcn_params(k_p, input_size, hidden_size, n_layer)
    packed_params = pack_params(raw_params)

    out, h_out = graph_gru_gcn_forward(inp, edge_index, h0, packed_params)
    jax.block_until_ready((out, h_out))

    assert out.shape == (n_layer, num_nodes, hidden_size)
    assert bool(jnp.all(jnp.isfinite(out)))

    # Numerical check against a pure-JAX reference that models the kernel's
    # bf16 rounding points (tight tolerance: only accumulation-order and
    # transcendental-approximation differences remain).
    a_hat = build_normalized_adjacency(edge_index, num_nodes)
    ref = reference_forward(a_hat, inp, h0, raw_params)
    max_err = float(jnp.max(jnp.abs(out - ref)))
    assert max_err < 5e-2, f"mismatch vs reference: max abs err {max_err}"

    print("KERNEL_OK")
</pallas_src>

<mosaic_0001>
module attributes {stable_mosaic.version = 11 : i64} {
  func.func @kernel(%arg0: memref<64x64xbf16, #tpu.memory_space<vmem>>, %arg1: memref<64x16xbf16, #tpu.memory_space<vmem>>, %arg2: memref<2x64x32xbf16, #tpu.memory_space<vmem>>, %arg3: memref<16x96xbf16, #tpu.memory_space<vmem>>, %arg4: memref<32x96xbf16, #tpu.memory_space<vmem>>, %arg5: memref<32x96xbf16, #tpu.memory_space<vmem>>, %arg6: memref<32x96xbf16, #tpu.memory_space<vmem>>, %arg7: memref<32x32xbf16, #tpu.memory_space<vmem>>, %arg8: memref<32x32xbf16, #tpu.memory_space<vmem>>, %arg9: memref<1x96xf32, #tpu.memory_space<vmem>>, %arg10: memref<1x96xf32, #tpu.memory_space<vmem>>, %arg11: memref<64x64xf32, #tpu.memory_space<vmem>>) attributes {dimension_semantics = [], scalar_prefetch = 0 : i64, scratch_operands = 0 : i64, tpu.core_type = #tpu.core_type<tc>} {
    %c0 = arith.constant 0 : index
    %c0_0 = arith.constant 0 : index
    %0 = vector.load %arg0[%c0, %c0_0] : memref<64x64xbf16, #tpu.memory_space<vmem>>, vector<64x64xbf16>
    %c0_1 = arith.constant 0 : index
    %c0_2 = arith.constant 0 : index
    %1 = vector.load %arg1[%c0_1, %c0_2] : memref<64x16xbf16, #tpu.memory_space<vmem>>, vector<64x16xbf16>
    %c0_3 = arith.constant 0 : index
    %c0_4 = arith.constant 0 : index
    %c0_5 = arith.constant 0 : index
    %2 = vector.load %arg2[%c0_3, %c0_4, %c0_5] : memref<2x64x32xbf16, #tpu.memory_space<vmem>>, vector<1x64x32xbf16>
    %3 = vector.shape_cast %2 : vector<1x64x32xbf16> to vector<64x32xbf16>
    %4 = arith.extf %3 : vector<64x32xbf16> to vector<64x32xf32>
    %c0_6 = arith.constant 0 : index
    %c0_7 = arith.constant 0 : index
    %5 = vector.load %arg3[%c0_6, %c0_7] : memref<16x96xbf16, #tpu.memory_space<vmem>>, vector<16x96xbf16>
    %cst = arith.constant dense<0.000000e+00> : vector<64x96xf32>
    %6 = tpu.matmul %1, %5, %cst {dimension_numbers = #tpu.dot_dimension_numbers<[1], [0], [0], [1], [0, 0, 1, 1], [], []>} : vector<64x16xbf16>, vector<16x96xbf16>, vector<64x96xf32> -> vector<64x96xf32>
    %c0_8 = arith.constant 0 : index
    %c0_9 = arith.constant 0 : index
    %7 = vector.load %arg5[%c0_8, %c0_9] : memref<32x96xbf16, #tpu.memory_space<vmem>>, vector<32x96xbf16>
    %cst_10 = arith.constant dense<0.000000e+00> : vector<64x96xf32>
    %8 = tpu.matmul %3, %7, %cst_10 {dimension_numbers = #tpu.dot_dimension_numbers<[1], [0], [0], [1], [0, 0, 1, 1], [], []>} : vector<64x32xbf16>, vector<32x96xbf16>, vector<64x96xf32> -> vector<64x96xf32>
    %9 = arith.addf %6, %8 : vector<64x96xf32>
    %10 = arith.truncf %9 : vector<64x96xf32> to vector<64x96xbf16>
    %cst_11 = arith.constant dense<0.000000e+00> : vector<64x96xf32>
    %11 = tpu.matmul %0, %10, %cst_11 {dimension_numbers = #tpu.dot_dimension_numbers<[1], [0], [0], [1], [0, 0, 1, 1], [], []>} : vector<64x64xbf16>, vector<64x96xbf16>, vector<64x96xf32> -> vector<64x96xf32>
    %c0_12 = arith.constant 0 : index
    %c0_13 = arith.constant 0 : index
    %12 = vector.load %arg9[%c0_12, %c0_13] : memref<1x96xf32, #tpu.memory_space<vmem>>, vector<1x96xf32>
    %13 = vector.extract_strided_slice %11 {offsets = [0, 0], sizes = [64, 32], strides = [1, 1]} : vector<64x96xf32> to vector<64x32xf32>
    %14 = vector.extract_strided_slice %12 {offsets = [0, 0], sizes = [1, 32], strides = [1, 1]} : vector<1x96xf32> to vector<1x32xf32>
    %15 = vector.broadcast %14 : vector<1x32xf32> to vector<64x32xf32>
    %16 = arith.addf %13, %15 : vector<64x32xf32>
    %17 = arith.negf %16 : vector<64x32xf32>
    %18 = math.exp %17 : vector<64x32xf32>
    %cst_14 = arith.constant 1.000000e+00 : f32
    %19 = vector.broadcast %cst_14 : f32 to vector<64x32xf32>
    %20 = arith.addf %19, %18 : vector<64x32xf32>
    %21 = arith.divf %19, %20 : vector<64x32xf32>
    %22 = vector.extract_strided_slice %11 {offsets = [0, 32], sizes = [64, 32], strides = [1, 1]} : vector<64x96xf32> to vector<64x32xf32>
    %23 = vector.extract_strided_slice %12 {offsets = [0, 32], sizes = [1, 32], strides = [1, 1]} : vector<1x96xf32> to vector<1x32xf32>
    %24 = vector.broadcast %23 : vector<1x32xf32> to vector<64x32xf32>
    %25 = arith.addf %22, %24 : vector<64x32xf32>
    %26 = arith.negf %25 : vector<64x32xf32>
    %27 = math.exp %26 : vector<64x32xf32>
    %cst_15 = arith.constant 1.000000e+00 : f32
    %28 = vector.broadcast %cst_15 : f32 to vector<64x32xf32>
    %29 = arith.addf %28, %27 : vector<64x32xf32>
    %30 = arith.divf %28, %29 : vector<64x32xf32>
    %31 = arith.mulf %30, %4 : vector<64x32xf32>
    %32 = arith.truncf %31 : vector<64x32xf32> to vector<64x32xbf16>
    %c0_16 = arith.constant 0 : index
    %c0_17 = arith.constant 0 : index
    %33 = vector.load %arg7[%c0_16, %c0_17] : memref<32x32xbf16, #tpu.memory_space<vmem>>, vector<32x32xbf16>
    %cst_18 = arith.constant dense<0.000000e+00> : vector<64x32xf32>
    %34 = tpu.matmul %32, %33, %cst_18 {dimension_numbers = #tpu.dot_dimension_numbers<[1], [0], [0], [1], [0, 0, 1, 1], [], []>} : vector<64x32xbf16>, vector<32x32xbf16>, vector<64x32xf32> -> vector<64x32xf32>
    %35 = arith.truncf %34 : vector<64x32xf32> to vector<64x32xbf16>
    %cst_19 = arith.constant dense<0.000000e+00> : vector<64x32xf32>
    %36 = tpu.matmul %0, %35, %cst_19 {dimension_numbers = #tpu.dot_dimension_numbers<[1], [0], [0], [1], [0, 0, 1, 1], [], []>} : vector<64x64xbf16>, vector<64x32xbf16>, vector<64x32xf32> -> vector<64x32xf32>
    %37 = vector.extract_strided_slice %11 {offsets = [0, 64], sizes = [64, 32], strides = [1, 1]} : vector<64x96xf32> to vector<64x32xf32>
    %38 = arith.addf %37, %36 : vector<64x32xf32>
    %39 = vector.extract_strided_slice %12 {offsets = [0, 64], sizes = [1, 32], strides = [1, 1]} : vector<1x96xf32> to vector<1x32xf32>
    %40 = vector.broadcast %39 : vector<1x32xf32> to vector<64x32xf32>
    %41 = arith.addf %38, %40 : vector<64x32xf32>
    %42 = math.tanh %41 : vector<64x32xf32>
    %43 = arith.mulf %21, %4 : vector<64x32xf32>
    %cst_20 = arith.constant 1.000000e+00 : f32
    %44 = vector.broadcast %cst_20 : f32 to vector<64x32xf32>
    %45 = arith.subf %44, %21 : vector<64x32xf32>
    %46 = arith.mulf %45, %42 : vector<64x32xf32>
    %47 = arith.addf %43, %46 : vector<64x32xf32>
    %48 = arith.truncf %47 : vector<64x32xf32> to vector<64x32xbf16>
    %c1 = arith.constant 1 : index
    %c0_21 = arith.constant 0 : index
    %c0_22 = arith.constant 0 : index
    %49 = vector.load %arg2[%c1, %c0_21, %c0_22] : memref<2x64x32xbf16, #tpu.memory_space<vmem>>, vector<1x64x32xbf16>
    %50 = vector.shape_cast %49 : vector<1x64x32xbf16> to vector<64x32xbf16>
    %51 = arith.extf %50 : vector<64x32xbf16> to vector<64x32xf32>
    %c0_23 = arith.constant 0 : index
    %c0_24 = arith.constant 0 : index
    %52 = vector.load %arg4[%c0_23, %c0_24] : memref<32x96xbf16, #tpu.memory_space<vmem>>, vector<32x96xbf16>
    %cst_25 = arith.constant dense<0.000000e+00> : vector<64x96xf32>
    %53 = tpu.matmul %48, %52, %cst_25 {dimension_numbers = #tpu.dot_dimension_numbers<[1], [0], [0], [1], [0, 0, 1, 1], [], []>} : vector<64x32xbf16>, vector<32x96xbf16>, vector<64x96xf32> -> vector<64x96xf32>
    %c0_26 = arith.constant 0 : index
    %c0_27 = arith.constant 0 : index
    %54 = vector.load %arg6[%c0_26, %c0_27] : memref<32x96xbf16, #tpu.memory_space<vmem>>, vector<32x96xbf16>
    %cst_28 = arith.constant dense<0.000000e+00> : vector<64x96xf32>
    %55 = tpu.matmul %50, %54, %cst_28 {dimension_numbers = #tpu.dot_dimension_numbers<[1], [0], [0], [1], [0, 0, 1, 1], [], []>} : vector<64x32xbf16>, vector<32x96xbf16>, vector<64x96xf32> -> vector<64x96xf32>
    %56 = arith.addf %53, %55 : vector<64x96xf32>
    %57 = arith.truncf %56 : vector<64x96xf32> to vector<64x96xbf16>
    %cst_29 = arith.constant dense<0.000000e+00> : vector<64x96xf32>
    %58 = tpu.matmul %0, %57, %cst_29 {dimension_numbers = #tpu.dot_dimension_numbers<[1], [0], [0], [1], [0, 0, 1, 1], [], []>} : vector<64x64xbf16>, vector<64x96xbf16>, vector<64x96xf32> -> vector<64x96xf32>
    %c0_30 = arith.constant 0 : index
    %c0_31 = arith.constant 0 : index
    %59 = vector.load %arg10[%c0_30, %c0_31] : memref<1x96xf32, #tpu.memory_space<vmem>>, vector<1x96xf32>
    %60 = vector.extract_strided_slice %58 {offsets = [0, 0], sizes = [64, 32], strides = [1, 1]} : vector<64x96xf32> to vector<64x32xf32>
    %61 = vector.extract_strided_slice %59 {offsets = [0, 0], sizes = [1, 32], strides = [1, 1]} : vector<1x96xf32> to vector<1x32xf32>
    %62 = vector.broadcast %61 : vector<1x32xf32> to vector<64x32xf32>
    %63 = arith.addf %60, %62 : vector<64x32xf32>
    %64 = arith.negf %63 : vector<64x32xf32>
    %65 = math.exp %64 : vector<64x32xf32>
    %cst_32 = arith.constant 1.000000e+00 : f32
    %66 = vector.broadcast %cst_32 : f32 to vector<64x32xf32>
    %67 = arith.addf %66, %65 : vector<64x32xf32>
    %68 = arith.divf %66, %67 : vector<64x32xf32>
    %69 = vector.extract_strided_slice %58 {offsets = [0, 32], sizes = [64, 32], strides = [1, 1]} : vector<64x96xf32> to vector<64x32xf32>
    %70 = vector.extract_strided_slice %59 {offsets = [0, 32], sizes = [1, 32], strides = [1, 1]} : vector<1x96xf32> to vector<1x32xf32>
    %71 = vector.broadcast %70 : vector<1x32xf32> to vector<64x32xf32>
    %72 = arith.addf %69, %71 : vector<64x32xf32>
    %73 = arith.negf %72 : vector<64x32xf32>
    %74 = math.exp %73 : vector<64x32xf32>
    %cst_33 = arith.constant 1.000000e+00 : f32
    %75 = vector.broadcast %cst_33 : f32 to vector<64x32xf32>
    %76 = arith.addf %75, %74 : vector<64x32xf32>
    %77 = arith.divf %75, %76 : vector<64x32xf32>
    %78 = arith.mulf %77, %51 : vector<64x32xf32>
    %79 = arith.truncf %78 : vector<64x32xf32> to vector<64x32xbf16>
    %c0_34 = arith.constant 0 : index
    %c0_35 = arith.constant 0 : index
    %80 = vector.load %arg8[%c0_34, %c0_35] : memref<32x32xbf16, #tpu.memory_space<vmem>>, vector<32x32xbf16>
    %cst_36 = arith.constant dense<0.000000e+00> : vector<64x32xf32>
    %81 = tpu.matmul %79, %80, %cst_36 {dimension_numbers = #tpu.dot_dimension_numbers<[1], [0], [0], [1], [0, 0, 1, 1], [], []>} : vector<64x32xbf16>, vector<32x32xbf16>, vector<64x32xf32> -> vector<64x32xf32>
    %82 = arith.truncf %81 : vector<64x32xf32> to vector<64x32xbf16>
    %cst_37 = arith.constant dense<0.000000e+00> : vector<64x32xf32>
    %83 = tpu.matmul %0, %82, %cst_37 {dimension_numbers = #tpu.dot_dimension_numbers<[1], [0], [0], [1], [0, 0, 1, 1], [], []>} : vector<64x64xbf16>, vector<64x32xbf16>, vector<64x32xf32> -> vector<64x32xf32>
    %84 = vector.extract_strided_slice %58 {offsets = [0, 64], sizes = [64, 32], strides = [1, 1]} : vector<64x96xf32> to vector<64x32xf32>
    %85 = arith.addf %84, %83 : vector<64x32xf32>
    %86 = vector.extract_strided_slice %59 {offsets = [0, 64], sizes = [1, 32], strides = [1, 1]} : vector<1x96xf32> to vector<1x32xf32>
    %87 = vector.broadcast %86 : vector<1x32xf32> to vector<64x32xf32>
    %88 = arith.addf %85, %87 : vector<64x32xf32>
    %89 = math.tanh %88 : vector<64x32xf32>
    %90 = arith.mulf %68, %51 : vector<64x32xf32>
    %cst_38 = arith.constant 1.000000e+00 : f32
    %91 = vector.broadcast %cst_38 : f32 to vector<64x32xf32>
    %92 = arith.subf %91, %68 : vector<64x32xf32>
    %93 = arith.mulf %92, %89 : vector<64x32xf32>
    %94 = arith.addf %90, %93 : vector<64x32xf32>
    %95 = tpu.concatenate %47, %94 in 1 : vector<64x32xf32>, vector<64x32xf32> -> vector<64x64xf32>
    %c0_39 = arith.constant 0 : index
    %c0_40 = arith.constant 0 : index
    %96 = vector.load %arg11[%c0_39, %c0_40] : memref<64x64xf32, #tpu.memory_space<vmem>>, vector<64x64xf32>
    tpu.vector_store %arg11[%c0_39, %c0_40], %95 {strides = array<i32>} : memref<64x64xf32, #tpu.memory_space<vmem>>, vector<64x64xf32>,
    return
  }
}

</mosaic_0001>

<bundles_post_ra>
// kernel: tpu_custom_call.1
= control target key start
LH: loop header
LB: loop body
LE: loop exit
PB: predicated region body
PF: predicated region fallthrough
CT: control target
= control target key end

     0   :  { %16 = vsyncpa [#allocation3], 0  ;;  %s2734_s0 = inlined_call_operand.vmem [shape: bf16[64,64], index: 0, kind: input, shape index: {}]   ;;  %s2735_s1 = inlined_call_operand.vmem [shape: bf16[64,16], index: 1, kind: input, shape index: {}]   ;;  %s2736_s2 = inlined_call_operand.vmem [shape: bf16[2,64,32], index: 2, kind: input, shape index: {}]   ;;  %s2737_s3 = inlined_call_operand.hbm [shape: bf16[16,96], index: 3, kind: input, shape index: {}]   ;;  %s2738_s4 = inlined_call_operand.vmem [shape: bf16[32,96], index: 4, kind: input, shape index: {}]   ;;  %s2739_s5 = inlined_call_operand.vmem [shape: bf16[32,96], index: 5, kind: input, shape index: {}]   ;;  %s2740_s6 = inlined_call_operand.vmem [shape: bf16[32,96], index: 6, kind: input, shape index: {}]   ;;  %s2741_s7 = inlined_call_operand.vmem [shape: bf16[32,32], index: 7, kind: input, shape index: {}]   ;;  %s2742_s8 = inlined_call_operand.vmem [shape: bf16[32,32], index: 8, kind: input, shape index: {}]   ;;  %s2743_s9 = inlined_call_operand.vmem [shape: f32[1,96], index: 9, kind: input, shape index: {}]   ;;  %s2744_s10 = inlined_call_operand.vmem [shape: f32[1,96], index: 10, kind: input, shape index: {}]   ;;  %s2745_s11 = inlined_call_operand.hbm [shape: f32[64,64], index: 11, kind: output, shape index: {}]  }
   0x1   :  { %17 = vsyncpa [#allocation4], 0  ;;  %s2108_s17 = smov [#allocation2]   ;;  %s2060_s21 = scalar_lea.hbm %s2737_s3, 128 }
   0x2   :  { %s29_s18 = sshll.u32 %s2108_s17, 4  ;;  %p2061_p0 = scmp.ne.s32.totalorder %s2737_s3, %s2060_s21  ;;  %s30_s18 = int_to_ptr.vmem [resolvable:$true] %s29_s18 }
   0x3   :  { %p2064_p1 = scmp.lt.u32.totalorder %s2060_s21, %s2737_s3 }
   0x5   :  { %p2066_p2 = pnand %p2064_p1, %p2061_p0 }
   0x7   :  { %2069 = shalt.err (!%p2066_p2)
}
   0x8   :  { %s2070_s26 = scalar_lea.vmem %s30_s18, 128  ;;  %p2075_p4 = scmp.lt.s32.totalorder %s30_s18, %s30_s18 }
   0x9   :  { %p2071_p3 = scmp.ne.s32.totalorder %s30_s18, %s2070_s26  ;;  %p2076_p5 = scmp.lt.s32.totalorder %s2070_s26, %s2070_s26 }
   0xb   :  { %p2077_p6 = por %p2076_p5, %p2075_p4 }
   0xd   :  { %p2078_p7 = pnand %p2077_p6, %p2071_p3 }
   0xf   :  { %2081 = shalt.err (!%p2078_p7)
}
  0x10   :  { %s2109_s27 = smov 64   ;;  %s2110_s28 = smov 4  }
  0x11   :  { %35 = dma.hbm_to_vmem [thread:$0]  %s2737_s3, 128, %s30_s18, [#allocation3], %s2109_s27, %s2109_s27, %s2110_s28  }
  0x12   :  { %2104 = dma.done.wait [#allocation3], 128  }
  0x13   :  { %2105 = vsyncadd [#allocation3], 4294967168  ;;  %v1929_v0 = vld [vmem:[%s2739_s5] sm:$0xff]   ;;  %v1930_v1 = vld [vmem:[%s2739_s5 + $0x8] sm:$0xff]   ;;  %vm124_vm0 = vcmask 261120   ;;  %vm228_vm1 = vcmask 130048  }
  0x14   :  { %1731 = vmatprep.subr.bf16.mxu0 %v1929_v0  ;;  %v2199_v2 = vld [vmem:[%s2736_s2] sm:$0xff]   ;;  %v2204_v3 = vld [vmem:[%s2736_s2 + $0x8] sm:$0xff]   ;;  %v2209_v5 = vld [vmem:[%s2736_s2 + $0x10] sm:$0xff]   ;;  %vm330_vm2 = vcmask 523264  }
  0x15   :  { %1732 = vmatpush3.bf16.msra.mxu0 %v1929_v0  ;;  %v1933_v4 = vld [vmem:[#allocation2] sm:$0xff]   ;;  %1735 = vmatprep.mubr.msk.bf16.mxu0 %vm124_vm0, %v2199_v2  ;;  %v2216_v6 = vld [vmem:[%s2736_s2 + $0x18] sm:$0xff]   ;;  %v1937_v8 = vld [vmem:[%s2735_s1 + $0x8] sm:$0xff]   ;;  %v78_v12 = vunpack.c.l.bf16 %v2199_v2  ;;  %v79_v13 = vunpack.c.h.bf16 %v2199_v2  ;;  %v80_v14 = vunpack.c.l.bf16 %v2204_v3  ;;  %v81_v15 = vunpack.c.h.bf16 %v2204_v3 }
  0x16   :  { %1733 = vmatprep.subr.bf16.mxu0 %v1930_v1  ;;  %v1936_v7 = vld [vmem:[%s2735_s1] sm:$0xff]   ;;  %v1938_v9 = vld [vmem:[%s2735_s1 + $0x10] sm:$0xff]   ;;  %v1939_v10 = vld [vmem:[%s2735_s1 + $0x18] sm:$0xff]   ;;  %v82_v16 = vunpack.c.l.bf16 %v2209_v5  ;;  %v83_v17 = vunpack.c.h.bf16 %v2209_v5  ;;  %v84_v18 = vunpack.c.l.bf16 %v2216_v6  ;;  %v85_v19 = vunpack.c.h.bf16 %v2216_v6  ;;  %s2111_s1 = smov 32  }
  0x17   :  { %v2239_v11 = vld [vmem:[%s2734_s0] sm:$0xff]   ;;  %v1889_v20 = vpack.i.bf16 %v79_v13, %v78_v12  ;;  %v1894_v22 = vpack.i.bf16 %v81_v15, %v80_v14  ;;  %v2276_v36 = vld [vmem:[%s2734_s0 + $0x8] sm:$0xff]   ;;  %v2281_v37 = vld [vmem:[%s2734_s0 + $0x10] sm:$0xff]  }
  0x18   :  { %1761 = vmatprep.mubr.msk.bf16.mxu1 %vm330_vm2, %v2239_v11  ;;  %v1899_v21 = vpack.i.bf16 %v83_v17, %v82_v16  ;;  %v1904_v23 = vpack.i.bf16 %v85_v19, %v84_v18  ;;  %v2290_v38 = vld [vmem:[%s2734_s0 + $0x18] sm:$0xff]   ;;  %v1944_v39 = vld [vmem:[%s2741_s7] sm:$0xff]   ;;  %v1945_v40 = vld [vmem:[%s2741_s7 + $0x8] sm:$0xff]   ;;  %s2112_s0 = smov 96  }
  0x19   :  { %1734 = vmatpush3.bf16.msra.mxu0 %v1930_v1  ;;  %1890 = vrot.lane.b32.xlu0 %v1889_v20, %s2111_s1  ;;  %v2303_v41 = vld [vmem:[%s2743_s9] ss:$0 sm:$0xff] }
  0x1a   :  { %1743 = vmatprep.subr.bf16.mxu0 %v1933_v4  ;;  %1900 = vrot.lane.b32.xlu1 %v1899_v21, %s2111_s1 }
  0x1c   :  { %1736 = vmatmul.mubr.msk.bf16.vlgmr.msra.gmra.mrb[0].mxu0 %vm124_vm0, %v2204_v3 }
  0x1d   :  { %1744 = vmatpush3.bf16.msra.mxu0 %v1933_v4  ;;  %1739 = vmatprep.mubr.msk.bf16.mxu0 %vm124_vm0, %v2209_v5 }
  0x1e   :  { %1895 = vrot.lane.b32.xlu0 %v1894_v22, %s2111_s1  ;;  %1905 = vrot.lane.b32.xlu1 %v1904_v23, %s2111_s1 }
  0x24   :  { %1740 = vmatmul.mubr.msk.bf16.gmra.mrb[4].mxu0 %vm124_vm0, %v2216_v6 }
  0x25   :  { %1745 = vmatprep.mubr.msk.bf16.mxu0 %vm228_vm1, %v1936_v7 }
  0x2c   :  { %1746 = vmatmul.mubr.msk.bf16.vlgmr.msra.gmra.mrb[0].mxu0 %vm228_vm1, %v1937_v8 }
  0x2d   :  { %1749 = vmatprep.mubr.msk.bf16.mxu0 %vm228_vm1, %v1938_v9 }
  0x34   :  { %1750 = vmatmul.mubr.msk.bf16.gmra.mrb[4].mxu0 %vm228_vm1, %v1939_v10 }
  0x35   :  { %1789 = vmatprep.mubr.msk.bf16.mxu0 %vm330_vm2, %v2239_v11 }
  0x8b   :  { %v1891_v22 = vpop.permute.xlu0 %1890 }
  0xff   :  { %v1747_v24 = vpop.f32.mrb[0].mxu0 }
 0x100   :  { %v275_v25 = vpop.f32.mrb[1].mxu0 }
 0x101   :  { %v1748_v26 = vpop.f32.mrb[2].mxu0 }
 0x102   :  { %v307_v27 = vpack.c.bf16 %v1748_v26, %v1747_v24  ;;  %v278_v28 = vpop.f32.mrb[3].mxu0 }
 0x103   :  { %v306_v29 = vpack.c.bf16 %v278_v28, %v275_v25 }
 0x105   :  { %1753 = vmatprep.subr.bf16.mxu1 %v306_v29 }
 0x106   :  { %1754 = vmatpush3.bf16.msra.mxu1 %v306_v29 }
 0x107   :  { %v1751_v30 = vpop.f32.mrb[4].mxu0  ;;  %1755 = vmatprep.subr.bf16.mxu1 %v307_v27 }
 0x108   :  { %v291_v31 = vpop.f32.mrb[5].mxu0 }
 0x109   :  { %v1752_v32 = vpop.f32.mrb[6].mxu0 }
 0x10a   :  { %v309_v33 = vpack.c.bf16 %v1752_v32, %v1751_v30  ;;  %v294_v34 = vpop.f32.mrb[7].mxu0  ;;  %1756 = vmatpush3.bf16.msra.mxu1 %v307_v27  ;;  %v1896_v27 = vpop.permute.xlu0 %1895 }
 0x10b   :  { %v308_v35 = vpack.c.bf16 %v294_v34, %v291_v31  ;;  %v1901_v32 = vpop.permute.xlu1 %1900  ;;  %v1898_v34 = vunpack.i.h.bf16 %v1896_v27 }
 0x10d   :  { %1757 = vmatprep.subr.bf16.mxu1 %v308_v35 }
 0x10e   :  { %1758 = vmatpush3.bf16.msra.mxu1 %v308_v35  ;;  %v1897_v35 = vunpack.i.l.bf16 %v1896_v27 }
 0x10f   :  { %1759 = vmatprep.subr.bf16.mxu1 %v309_v33 }
 0x112   :  { %1760 = vmatpush3.bf16.msra.mxu1 %v309_v33 }
 0x113   :  { %1769 = vmatprep.subr.bf16.mxu1 %v1944_v39 }
 0x115   :  { %1762 = vmatmul.mubr.msk.bf16.vlgmr.msra.gmra.mrb[0].mxu1 %vm330_vm2, %v2276_v36 }
 0x116   :  { %1765 = vmatprep.mubr.msk.bf16.mxu1 %vm330_vm2, %v2281_v37  ;;  %1770 = vmatpush3.bf16.msra.mxu1 %v1944_v39 }
 0x117   :  { %1771 = vmatprep.subr.bf16.mxu1 %v1945_v40 }
 0x11a   :  { %1772 = vmatpush3.bf16.msra.mxu1 %v1945_v40  ;;  %v1892_v40 = vunpack.i.l.bf16 %v1891_v22 }
 0x11d   :  { %1766 = vmatmul.mubr.msk.bf16.gmra.mrb[4].mxu1 %vm330_vm2, %v2290_v38 }
 0x1e8   :  { %v2305_v42 = vpop.f32.mrb[0].mxu1 }
 0x1e9   :  { %v417_v43 = vadd.f32 %v2305_v42, %v2303_v41  ;;  %v2309_v44 = vpop.f32.mrb[1].mxu1 }
 0x1ea   :  { %v415_v45 = vadd.f32 %v2303_v41, %v2309_v44  ;;  %v2313_v46 = vpop.f32.mrb[2].mxu1 }
 0x1eb   :  { %v1601_v47 = vmul.f32 -1.442695, %v417_v43  ;;  %v418_v48 = vadd.f32 %v2313_v46, %v2303_v41  ;;  %v2317_v49 = vpop.f32.mrb[3].mxu1 }
 0x1ec   :  { %v1599_v50 = vmul.f32 -1.442695, %v415_v45  ;;  %v416_v51 = vadd.f32 %v2303_v41, %v2317_v49 }
 0x1ed   :  { %1964 = vpow2.f32 %v1601_v47  ;;  %v1602_v52 = vmul.f32 -1.442695, %v418_v48  ;;  %v1893_v47 = vunpack.i.h.bf16 %v1891_v22 }
 0x1ee   :  { %1966 = vpow2.f32 %v1599_v50  ;;  %v1600_v53 = vmul.f32 -1.442695, %v416_v51 }
 0x1ef   :  { %1968 = vpow2.f32 %v1602_v52 }
 0x1f0   :  { %1970 = vpow2.f32 %v1600_v53  ;;  %v2321_v54 = vpop.f32.mrb[4].mxu1 }
 0x1f1   :  { %v421_v55 = vadd.f32 %v2321_v54, %v2303_v41  ;;  %v2325_v56 = vpop.f32.mrb[5].mxu1 }
 0x1f2   :  { %v419_v57 = vadd.f32 %v2303_v41, %v2325_v56  ;;  %v2329_v58 = vpop.f32.mrb[6].mxu1 }
 0x1f3   :  { %v1605_v59 = vmul.f32 -1.442695, %v421_v55  ;;  %v422_v60 = vadd.f32 %v2329_v58, %v2303_v41  ;;  %v2333_v61 = vpop.f32.mrb[7].mxu1  ;;  %v1906_v55 = vpop.permute.xlu1 %1905 }
 0x1f4   :  { %v1603_v62 = vmul.f32 -1.442695, %v419_v57  ;;  %v420_v63 = vadd.f32 %v2303_v41, %v2333_v61 }
 0x1f5   :  { %1972 = vpow2.f32 %v1605_v59  ;;  %v1606_v0 = vmul.f32 -1.442695, %v422_v60  ;;  %v1908_v60 = vunpack.i.h.bf16 %v1906_v55 }
 0x1f6   :  { %1974 = vpow2.f32 %v1603_v62  ;;  %v1604_v1 = vmul.f32 -1.442695, %v420_v63  ;;  %v1907_v62 = vunpack.i.l.bf16 %v1906_v55 }
 0x1f7   :  { %v1965_v4 = vpop.eup %1964  ;;  %1976 = vpow2.f32 %v1606_v0  ;;  %v1902_v0 = vunpack.i.l.bf16 %v1901_v32 }
 0x1f8   :  { %v1967_v7 = vpop.eup %1966  ;;  %v449_v8 = vadd.f32 1.0, %v1965_v4  ;;  %1978 = vpow2.f32 %v1604_v1 }
 0x1f9   :  { %v1969_v9 = vpop.eup %1968  ;;  %v447_v10 = vadd.f32 1.0, %v1967_v7  ;;  %v1903_v7 = vunpack.i.h.bf16 %v1901_v32 }
 0x1fa   :  { %v1971_v20 = vpop.eup %1970  ;;  %1980 = vrcp.f32 %v449_v8  ;;  %v450_v21 = vadd.f32 1.0, %v1969_v9 }
 0x1fb   :  { %1982 = vrcp.f32 %v447_v10  ;;  %v448_v23 = vadd.f32 1.0, %v1971_v20 }
 0x1fc   :  { %1984 = vrcp.f32 %v450_v21 }
 0x1fd   :  { %1986 = vrcp.f32 %v448_v23 }
 0x1ff   :  { %v1973_v24 = vpop.eup %1972 }
 0x200   :  { %v1975_v25 = vpop.eup %1974  ;;  %v453_v26 = vadd.f32 1.0, %v1973_v24 }
 0x201   :  { %v1977_v28 = vpop.eup %1976  ;;  %v451_v29 = vadd.f32 1.0, %v1975_v25 }
 0x202   :  { %v1979_v30 = vpop.eup %1978  ;;  %1988 = vrcp.f32 %v453_v26  ;;  %v454_v31 = vadd.f32 1.0, %v1977_v28 }
 0x203   :  { %1990 = vrcp.f32 %v451_v29  ;;  %v452_v33 = vadd.f32 1.0, %v1979_v30 }
 0x204   :  { %v2337_v39 = vpop.eup %1980  ;;  %1992 = vrcp.f32 %v454_v31 }
 0x205   :  { %v2339_v43 = vpop.eup %1982  ;;  %1994 = vrcp.f32 %v452_v33  ;;  %v505_v50 = vmul.f32 %v2337_v39, %v1897_v35 }
 0x206   :  { %v2341_v45 = vpop.eup %1984  ;;  %v503_v52 = vmul.f32 %v2339_v43, %v1892_v40 }
 0x207   :  { %v2343_v48 = vpop.eup %1986  ;;  %v506_v51 = vmul.f32 %v2341_v45, %v1898_v34 }
 0x208   :  { %v504_v53 = vmul.f32 %v2343_v48, %v1893_v47 }
 0x209   :  { %v512_v57 = vpack.c.bf16 %v506_v51, %v505_v50 }
 0x20a   :  { %v511_v59 = vpack.c.bf16 %v504_v53, %v503_v52 }
 0x20b   :  { %525 = vrot.lane.b32.xlu1 %v512_v57, %s2112_s0 }
 0x20c   :  { %v2350_v63 = vpop.eup %1988  ;;  %523 = vrot.lane.b32.xlu0 %v511_v59, %s2112_s0 }
 0x20d   :  { %v2353_v1 = vpop.eup %1990  ;;  %v509_v9 = vmul.f32 %v2350_v63, %v1907_v62  ;;  %v751_v5 = vmul.f32 %v2350_v63, %v84_v18 }
 0x20e   :  { %v2355_v4 = vpop.eup %1992  ;;  %v507_v20 = vmul.f32 %v2353_v1, %v1902_v0 }
 0x20f   :  { %v2357_v8 = vpop.eup %1994  ;;  %v510_v10 = vmul.f32 %v2355_v4, %v1908_v60 }
 0x210   :  { %v508_v21 = vmul.f32 %v2357_v8, %v1903_v7  ;;  %v1946_v7 = vld [vmem:[%s2740_s6] sm:$0xff]  }
 0x211   :  { %v514_v22 = vpack.c.bf16 %v510_v10, %v509_v9  ;;  %v1947_v9 = vld [vmem:[%s2740_s6 + $0x8] sm:$0xff]   ;;  %v2394_v10 = vld [vmem:[%s2736_s2 + $0x20] sm:$0xff]   ;;  %1797 = vmatprep.subr.bf16.mxu1 %v1946_v7 }
 0x212   :  { %v513_v23 = vpack.c.bf16 %v508_v21, %v507_v20  ;;  %v2401_v20 = vld [vmem:[%s2736_s2 + $0x28] sm:$0xff]   ;;  %v1950_v21 = vld [vmem:[%s2738_s4] sm:$0xff]  }
 0x213   :  { %529 = vrot.lane.b32.xlu1 %v514_v22, %s2112_s0  ;;  %v824_v18 = vunpack.c.l.bf16 %v2401_v20  ;;  %v825_v6 = vunpack.c.h.bf16 %v2401_v20 }
 0x214   :  { %527 = vrot.lane.b32.xlu0 %v513_v23, %s2112_s0 }
 0x27d   :  { %v526_v25 = vpop.permute.xlu1 %525 }
 0x27e   :  { %v524_v24 = vpop.permute.xlu0 %523 }
 0x27f   :  { %1773 = vmatprep.mubr.msk.bf16.mxu1 %vm124_vm0, %v524_v24 }
 0x280   :  { %1774 = vmatmul.mubr.msk.bf16.vlgmr.msra.gmra.mrb[8].mxu1 %vm124_vm0, %v526_v25 }
 0x281   :  { %1798 = vmatpush3.bf16.msra.mxu1 %v1946_v7 }
 0x282   :  { %1799 = vmatprep.subr.bf16.mxu1 %v1947_v9 }
 0x285   :  { %v530_v27 = vpop.permute.xlu1 %529  ;;  %1800 = vmatpush3.bf16.msra.mxu1 %v1947_v9 }
 0x286   :  { %v528_v26 = vpop.permute.xlu0 %527  ;;  %1809 = vmatprep.subr.bf16.mxu1 %v1950_v21 }
 0x287   :  { %1777 = vmatprep.mubr.msk.bf16.mxu1 %vm124_vm0, %v528_v26 }
 0x288   :  { %1778 = vmatmul.mubr.msk.bf16.gmra.mrb[12].mxu1 %vm124_vm0, %v530_v27  ;;  %v2414_v27 = vld [vmem:[%s2736_s2 + $0x30] sm:$0xff]  }
 0x289   :  { %1801 = vmatprep.mubr.msk.bf16.mxu1 %vm124_vm0, %v2394_v10 }
 0x290   :  { %1802 = vmatmul.mubr.msk.bf16.vlgmr.msra.gmra.mrb[16].mxu1 %vm124_vm0, %v2401_v20 }
 0x291   :  { %1810 = vmatpush3.bf16.msra.mxu1 %v1950_v21  ;;  %1805 = vmatprep.mubr.msk.bf16.mxu1 %vm124_vm0, %v2414_v27 }
 0x353   :  { %v1775_v28 = vpop.f32.mrb[8].mxu1 }
 0x354   :  { %v589_v29 = vpop.f32.mrb[9].mxu1 }
 0x355   :  { %v1776_v30 = vpop.f32.mrb[10].mxu1 }
 0x356   :  { %v621_v31 = vpack.c.bf16 %v1776_v30, %v1775_v28  ;;  %v592_v32 = vpop.f32.mrb[11].mxu1 }
 0x357   :  { %v620_v33 = vpack.c.bf16 %v592_v32, %v589_v29  ;;  %v2419_v29 = vld [vmem:[%s2736_s2 + $0x38] sm:$0xff]  }
 0x358   :  { %1806 = vmatmul.mubr.msk.bf16.gmra.mrb[20].mxu1 %vm124_vm0, %v2419_v29 }
 0x359   :  { %1781 = vmatprep.subr.bf16.mxu0 %v620_v33 }
 0x35a   :  { %1782 = vmatpush3.bf16.msra.mxu0 %v620_v33 }
 0x35b   :  { %v1779_v34 = vpop.f32.mrb[12].mxu1  ;;  %1783 = vmatprep.subr.bf16.mxu0 %v621_v31 }
 0x35c   :  { %v605_v35 = vpop.f32.mrb[13].mxu1 }
 0x35d   :  { %v1780_v40 = vpop.f32.mrb[14].mxu1 }
 0x35e   :  { %v623_v47 = vpack.c.bf16 %v1780_v40, %v1779_v34  ;;  %v608_v50 = vpop.f32.mrb[15].mxu1  ;;  %1784 = vmatpush3.bf16.msra.mxu0 %v621_v31 }
 0x35f   :  { %v622_v51 = vpack.c.bf16 %v608_v50, %v605_v35 }
 0x361   :  { %1785 = vmatprep.subr.bf16.mxu0 %v622_v51 }
 0x362   :  { %1786 = vmatpush3.bf16.msra.mxu0 %v622_v51 }
 0x363   :  { %1787 = vmatprep.subr.bf16.mxu0 %v623_v47 }
 0x366   :  { %1788 = vmatpush3.bf16.msra.mxu0 %v623_v47 }
 0x369   :  { %1790 = vmatmul.mubr.msk.bf16.vlgmr.msra.gmra.mrb[8].mxu0 %vm330_vm2, %v2276_v36 }
 0x36a   :  { %1793 = vmatprep.mubr.msk.bf16.mxu0 %vm330_vm2, %v2281_v37 }
 0x371   :  { %1794 = vmatmul.mubr.msk.bf16.gmra.mrb[12].mxu0 %vm330_vm2, %v2290_v38 }
 0x372   :  { %1829 = vmatprep.mubr.msk.bf16.mxu0 %vm330_vm2, %v2239_v11 }
 0x43c   :  { %v1791_v52 = vpop.f32.mrb[8].mxu0 }
 0x43d   :  { %v658_v53 = vpop.f32.mrb[9].mxu0 }
 0x43e   :  { %697 = vrot.lane.b32.xlu0 %v658_v53, %s2109_s27  ;;  %v1792_v55 = vpop.f32.mrb[10].mxu0 }
 0x43f   :  { %v661_v57 = vpop.f32.mrb[11].mxu0 }
 0x440   :  { %699 = vrot.lane.b32.xlu1 %v661_v57, %s2109_s27 }
 0x442   :  { %701 = vrot.lane.b32.xlu0 %v1791_v52, %s2109_s27 }
 0x444   :  { %703 = vrot.lane.b32.xlu1 %v1792_v55, %s2109_s27  ;;  %v1795_v59 = vpop.f32.mrb[12].mxu0 }
 0x445   :  { %v674_v60 = vpop.f32.mrb[13].mxu0 }
 0x446   :  { %705 = vrot.lane.b32.xlu0 %v674_v60, %s2109_s27  ;;  %v1796_v62 = vpop.f32.mrb[14].mxu0 }
 0x447   :  { %v677_v0 = vpop.f32.mrb[15].mxu0 }
 0x448   :  { %707 = vrot.lane.b32.xlu1 %v677_v0, %s2109_s27 }
 0x44a   :  { %709 = vrot.lane.b32.xlu0 %v1795_v59, %s2109_s27 }
 0x44c   :  { %711 = vrot.lane.b32.xlu1 %v1796_v62, %s2109_s27 }
 0x4b0   :  { %v698_v22 = vpop.permute.xlu0 %697 }
 0x4b1   :  { %v721_v23 = vadd.f32 %v698_v22, %v2309_v44  ;;  %v754_v22 = vsub.f32 1.0, %v2343_v48 }
 0x4b2   :  { %v700_v24 = vpop.permute.xlu1 %699 }
 0x4b3   :  { %v729_v25 = vadd.f32 %v2303_v41, %v721_v23  ;;  %v722_v26 = vadd.f32 %v700_v24, %v2317_v49  ;;  %v745_v24 = vmul.f32 %v2339_v43, %v78_v12 }
 0x4b4   :  { %v702_v28 = vpop.permute.xlu0 %701 }
 0x4b5   :  { %1996 = vtanh.f32 %v729_v25  ;;  %v730_v30 = vadd.f32 %v2303_v41, %v722_v26  ;;  %v723_v44 = vadd.f32 %v2305_v42, %v702_v28  ;;  %v1953_v42 = vld [vmem:[%s2738_s4 + $0x8] sm:$0xff]   ;;  %v746_v25 = vmul.f32 %v2343_v48, %v79_v13 }
 0x4b6   :  { %v704_v31 = vpop.permute.xlu1 %703  ;;  %1811 = vmatprep.subr.bf16.mxu1 %v1953_v42  ;;  %v755_v28 = vsub.f32 1.0, %v2337_v39  ;;  %v748_v13 = vmul.f32 %v2341_v45, %v81_v15  ;;  %v757_v48 = vsub.f32 1.0, %v2353_v1  ;;  %v749_v15 = vmul.f32 %v2353_v1, %v82_v16 }
 0x4b7   :  { %1998 = vtanh.f32 %v730_v30  ;;  %v731_v49 = vadd.f32 %v2303_v41, %v723_v44  ;;  %v724_v32 = vadd.f32 %v2313_v46, %v704_v31  ;;  %1812 = vmatpush3.bf16.msra.mxu1 %v1953_v42  ;;  %v752_v16 = vmul.f32 %v2355_v4, %v85_v19 }
 0x4b8   :  { %v706_v33 = vpop.permute.xlu0 %705  ;;  %v822_v19 = vunpack.c.l.bf16 %v2394_v10 }
 0x4b9   :  { %2000 = vtanh.f32 %v731_v49  ;;  %v732_v34 = vadd.f32 %v2303_v41, %v724_v32  ;;  %v725_v35 = vadd.f32 %v706_v33, %v2325_v56  ;;  %v756_v32 = vsub.f32 1.0, %v2341_v45 }
 0x4ba   :  { %v708_v40 = vpop.permute.xlu1 %707  ;;  %v747_v33 = vmul.f32 %v2337_v39, %v80_v14  ;;  %v758_v14 = vsub.f32 1.0, %v2357_v8  ;;  %v750_v45 = vmul.f32 %v2357_v8, %v83_v17 }
 0x4bb   :  { %2002 = vtanh.f32 %v732_v34  ;;  %v733_v47 = vadd.f32 %v2303_v41, %v725_v35  ;;  %v726_v50 = vadd.f32 %v708_v40, %v2333_v61 }
 0x4bc   :  { %v710_v46 = vpop.permute.xlu0 %709 }
 0x4bd   :  { %2004 = vtanh.f32 %v733_v47  ;;  %v734_v51 = vadd.f32 %v2303_v41, %v726_v50  ;;  %v727_v52 = vadd.f32 %v2321_v54, %v710_v46  ;;  %v759_v47 = vsub.f32 1.0, %v2350_v63 }
 0x4be   :  { %v712_v53 = vpop.permute.xlu1 %711  ;;  %v823_v63 = vunpack.c.h.bf16 %v2394_v10 }
 0x4bf   :  { %v1997_v56 = vpop.eup %1996  ;;  %2006 = vtanh.f32 %v734_v51  ;;  %v735_v55 = vadd.f32 %v2303_v41, %v727_v52  ;;  %v728_v57 = vadd.f32 %v2329_v58, %v712_v53 }
 0x4c0   :  { %769 = vrot.lane.b32.xlu0 %v1997_v56, %s2109_s27  ;;  %v760_v56 = vsub.f32 1.0, %v2355_v4  ;;  %v828_v4 = vunpack.c.l.bf16 %v2419_v29 }
 0x4c1   :  { %v1999_v59 = vpop.eup %1998  ;;  %2008 = vtanh.f32 %v735_v55  ;;  %v736_v61 = vadd.f32 %v2303_v41, %v728_v57  ;;  %v753_v41 = vsub.f32 1.0, %v2339_v43 }
 0x4c2   :  { %771 = vrot.lane.b32.xlu1 %v1999_v59, %s2109_s27 }
 0x4c3   :  { %v2001_v60 = vpop.eup %2000  ;;  %2010 = vtanh.f32 %v736_v61  ;;  %v829_v61 = vunpack.c.h.bf16 %v2419_v29 }
 0x4c4   :  { %773 = vrot.lane.b32.xlu0 %v2001_v60, %s2109_s27  ;;  %v826_v60 = vunpack.c.l.bf16 %v2414_v27 }
 0x4c5   :  { %v2003_v54 = vpop.eup %2002 }
 0x4c6   :  { %775 = vrot.lane.b32.xlu1 %v2003_v54, %s2109_s27  ;;  %v827_v54 = vunpack.c.h.bf16 %v2414_v27 }
 0x4c7   :  { %v2005_v62 = vpop.eup %2004 }
 0x4c8   :  { %777 = vrot.lane.b32.xlu0 %v2005_v62, %s2109_s27  ;;  %v1909_v62 = vpack.i.bf16 %v823_v63, %v822_v19 }
 0x4c9   :  { %v2007_v0 = vpop.eup %2006 }
 0x4ca   :  { %779 = vrot.lane.b32.xlu1 %v2007_v0, %s2109_s27  ;;  %v1924_v0 = vpack.i.bf16 %v829_v61, %v828_v4 }
 0x4cb   :  { %v2009_v58 = vpop.eup %2008 }
 0x4cc   :  { %781 = vrot.lane.b32.xlu0 %v2009_v58, %s2109_s27  ;;  %v1919_v58 = vpack.i.bf16 %v827_v54, %v826_v60 }
 0x4cd   :  { %v2011_v7 = vpop.eup %2010 }
 0x4ce   :  { %783 = vrot.lane.b32.xlu1 %v2011_v7, %s2109_s27 }
 0x4d0   :  { %1910 = vrot.lane.b32.xlu0 %v1909_v62, %s2111_s1 }
 0x4d4   :  { %1920 = vrot.lane.b32.xlu0 %v1919_v58, %s2111_s1 }
 0x532   :  { %v770_v9 = vpop.permute.xlu0 %769 }
 0x533   :  { %v793_v21 = vmul.f32 %v770_v9, %v753_v41 }
 0x534   :  { %v772_v23 = vpop.permute.xlu1 %771 }
 0x535   :  { %v794_v26 = vmul.f32 %v772_v23, %v754_v22  ;;  %v2458_v44 = vadd.f32 %v793_v21, %v745_v24 }
 0x536   :  { %v774_v30 = vpop.permute.xlu0 %773 }
 0x537   :  { %v2460_v31 = vadd.f32 %v794_v26, %v746_v25  ;;  %v795_v49 = vmul.f32 %v774_v30, %v755_v28 }
 0x538   :  { %v776_v12 = vpop.permute.xlu1 %775 }
 0x539   :  { %v809_v2 = vpack.c.bf16 %v2460_v31, %v2458_v44  ;;  %v796_v43 = vmul.f32 %v776_v12, %v756_v32  ;;  %v2472_v35 = vadd.f32 %v795_v49, %v747_v33  ;;  %v1954_v32 = vld [vmem:[%s2742_s8] sm:$0xff]   ;;  %v1955_v33 = vld [vmem:[%s2742_s8 + $0x8] sm:$0xff]   ;;  %s2113_s8 = smov [#allocation5]  }
 0x53a   :  { %v778_v34 = vpop.permute.xlu0 %777  ;;  %v2554_v12 = vld [vmem:[%s2744_s10] ss:$0 sm:$0xff]  ;;  %s1559_s10 = sshll.u32 %s2113_s8, 4  ;;  %s1560_s10 = int_to_ptr.vmem [resolvable:$true] %s1559_s10 }
 0x53b   :  { %v2474_v42 = vadd.f32 %v796_v43, %v748_v13  ;;  %v797_v40 = vmul.f32 %v778_v34, %v757_v48  ;;  %1813 = vmatprep.mubr.msk.bf16.mxu1 %vm124_vm0, %v809_v2  ;;  %p2087_p9 = scmp.lt.s32.totalorder %s1560_s10, %s1560_s10 }
 0x53c   :  { %v780_v39 = vpop.permute.xlu1 %779 }
 0x53d   :  { %v810_v3 = vpack.c.bf16 %v2474_v42, %v2472_v35  ;;  %v798_v50 = vmul.f32 %v780_v39, %v758_v14  ;;  %v2487_v51 = vadd.f32 %v797_v40, %v749_v15 }
 0x53e   :  { %v782_v46 = vpop.permute.xlu0 %781 }
 0x53f   :  { %v2489_v52 = vadd.f32 %v798_v50, %v750_v45  ;;  %v799_v53 = vmul.f32 %v782_v46, %v759_v47  ;;  %1814 = vmatmul.mubr.msk.bf16.vlgmr.msra.gmra.mrb[16].mxu1 %vm124_vm0, %v810_v3 }
 0x540   :  { %v784_v55 = vpop.permute.xlu1 %783 }
 0x541   :  { %v811_v57 = vpack.c.bf16 %v2489_v52, %v2487_v51  ;;  %v800_v17 = vmul.f32 %v784_v55, %v760_v56  ;;  %v2501_v1 = vadd.f32 %v799_v53, %v751_v5 }
 0x543   :  { %v2503_v8 = vadd.f32 %v800_v17, %v752_v16  ;;  %1817 = vmatprep.mubr.msk.bf16.mxu1 %vm124_vm0, %v811_v57 }
 0x545   :  { %v812_v59 = vpack.c.bf16 %v2503_v8, %v2501_v1 }
 0x547   :  { %1818 = vmatmul.mubr.msk.bf16.gmra.mrb[20].mxu1 %vm124_vm0, %v812_v59 }
 0x548   :  { %1857 = vmatprep.mubr.msk.bf16.mxu1 %vm330_vm2, %v2239_v11  ;;  %v1914_v11 = vpack.i.bf16 %v825_v6, %v824_v18 }
 0x54a   :  { %1915 = vrot.lane.b32.xlu1 %v1914_v11, %s2111_s1 }
 0x54e   :  { %1925 = vrot.lane.b32.xlu1 %v1924_v0, %s2111_s1 }
 0x612   :  { %v1815_v7 = vpop.f32.mrb[16].mxu1 }
 0x613   :  { %v1005_v41 = vpop.f32.mrb[17].mxu1 }
 0x614   :  { %v1816_v9 = vpop.f32.mrb[18].mxu1 }
 0x615   :  { %v1037_v21 = vpack.c.bf16 %v1816_v9, %v1815_v7  ;;  %v1008_v22 = vpop.f32.mrb[19].mxu1 }
 0x616   :  { %v1036_v23 = vpack.c.bf16 %v1008_v22, %v1005_v41 }
 0x618   :  { %1821 = vmatprep.subr.bf16.mxu0 %v1036_v23 }
 0x619   :  { %1822 = vmatpush3.bf16.msra.mxu0 %v1036_v23 }
 0x61a   :  { %v1819_v24 = vpop.f32.mrb[20].mxu1  ;;  %1823 = vmatprep.subr.bf16.mxu0 %v1037_v21 }
 0x61b   :  { %v1021_v25 = vpop.f32.mrb[21].mxu1 }
 0x61c   :  { %v1820_v26 = vpop.f32.mrb[22].mxu1 }
 0x61d   :  { %v1039_v28 = vpack.c.bf16 %v1820_v26, %v1819_v24  ;;  %v1024_v30 = vpop.f32.mrb[23].mxu1  ;;  %1824 = vmatpush3.bf16.msra.mxu0 %v1037_v21 }
 0x61e   :  { %v1038_v49 = vpack.c.bf16 %v1024_v30, %v1021_v25 }
 0x620   :  { %1825 = vmatprep.subr.bf16.mxu0 %v1038_v49 }
 0x621   :  { %1826 = vmatpush3.bf16.msra.mxu0 %v1038_v49 }
 0x622   :  { %1827 = vmatprep.subr.bf16.mxu0 %v1039_v28 }
 0x625   :  { %1828 = vmatpush3.bf16.msra.mxu0 %v1039_v28  ;;  %v1916_v28 = vpop.permute.xlu1 %1915 }
 0x626   :  { %1837 = vmatprep.subr.bf16.mxu0 %v1954_v32 }
 0x628   :  { %1830 = vmatmul.mubr.msk.bf16.vlgmr.msra.gmra.mrb[16].mxu0 %vm330_vm2, %v2276_v36 }
 0x629   :  { %1833 = vmatprep.mubr.msk.bf16.mxu0 %vm330_vm2, %v2281_v37  ;;  %1838 = vmatpush3.bf16.msra.mxu0 %v1954_v32  ;;  %v1911_v32 = vpop.permute.xlu0 %1910 }
 0x62a   :  { %1839 = vmatprep.subr.bf16.mxu0 %v1955_v33 }
 0x62d   :  { %1840 = vmatpush3.bf16.msra.mxu0 %v1955_v33 }
 0x630   :  { %1834 = vmatmul.mubr.msk.bf16.gmra.mrb[20].mxu0 %vm330_vm2, %v2290_v38 }
 0x6fb   :  { %v2556_v2 = vpop.f32.mrb[16].mxu0 }
 0x6fc   :  { %v1114_v13 = vadd.f32 %v2556_v2, %v2554_v12  ;;  %v2560_v43 = vpop.f32.mrb[17].mxu0 }
 0x6fd   :  { %v1112_v48 = vadd.f32 %v2554_v12, %v2560_v43  ;;  %v2564_v34 = vpop.f32.mrb[18].mxu0 }
 0x6fe   :  { %v1648_v40 = vmul.f32 -1.442695, %v1114_v13  ;;  %v1115_v14 = vadd.f32 %v2564_v34, %v2554_v12  ;;  %v2568_v39 = vpop.f32.mrb[19].mxu0 }
 0x6ff   :  { %v1646_v47 = vmul.f32 -1.442695, %v1112_v48  ;;  %v1113_v3 = vadd.f32 %v2554_v12, %v2568_v39 }
 0x700   :  { %2012 = vpow2.f32 %v1648_v40  ;;  %v1649_v15 = vmul.f32 -1.442695, %v1115_v14  ;;  %v1918_v40 = vunpack.i.h.bf16 %v1916_v28  ;;  %v1917_v14 = vunpack.i.l.bf16 %v1916_v28 }
 0x701   :  { %2014 = vpow2.f32 %v1646_v47  ;;  %v1647_v45 = vmul.f32 -1.442695, %v1113_v3  ;;  %v1913_v3 = vunpack.i.h.bf16 %v1911_v32 }
 0x702   :  { %2016 = vpow2.f32 %v1649_v15  ;;  %v1912_v15 = vunpack.i.l.bf16 %v1911_v32 }
 0x703   :  { %2018 = vpow2.f32 %v1647_v45  ;;  %v2572_v50 = vpop.f32.mrb[20].mxu0 }
 0x704   :  { %v1118_v46 = vadd.f32 %v2572_v50, %v2554_v12  ;;  %v2576_v53 = vpop.f32.mrb[21].mxu0 }
 0x705   :  { %v1116_v56 = vadd.f32 %v2554_v12, %v2576_v53  ;;  %v2580_v55 = vpop.f32.mrb[22].mxu0 }
 0x706   :  { %v1652_v57 = vmul.f32 -1.442695, %v1118_v46  ;;  %v1119_v5 = vadd.f32 %v2580_v55, %v2554_v12  ;;  %v2584_v16 = vpop.f32.mrb[23].mxu0 }
 0x707   :  { %v1650_v17 = vmul.f32 -1.442695, %v1116_v56  ;;  %v1117_v59 = vadd.f32 %v2554_v12, %v2584_v16 }
 0x708   :  { %2020 = vpow2.f32 %v1652_v57  ;;  %v1653_v11 = vmul.f32 -1.442695, %v1119_v5 }
 0x709   :  { %2022 = vpow2.f32 %v1650_v17  ;;  %v1651_v62 = vmul.f32 -1.442695, %v1117_v59 }
 0x70a   :  { %v2013_v0 = vpop.eup %2012  ;;  %2024 = vpow2.f32 %v1653_v11  ;;  %v1926_v11 = vpop.permute.xlu1 %1925 }
 0x70b   :  { %v2015_v58 = vpop.eup %2014  ;;  %v1146_v7 = vadd.f32 1.0, %v2013_v0  ;;  %2026 = vpow2.f32 %v1651_v62  ;;  %v1921_v62 = vpop.permute.xlu0 %1920 }
 0x70c   :  { %v2017_v41 = vpop.eup %2016  ;;  %v1144_v9 = vadd.f32 1.0, %v2015_v58 }
 0x70d   :  { %v2019_v21 = vpop.eup %2018  ;;  %2028 = vrcp.f32 %v1146_v7  ;;  %v1147_v22 = vadd.f32 1.0, %v2017_v41  ;;  %v1928_v7 = vunpack.i.h.bf16 %v1926_v11  ;;  %v1927_v41 = vunpack.i.l.bf16 %v1926_v11 }
 0x70e   :  { %2030 = vrcp.f32 %v1144_v9  ;;  %v1145_v23 = vadd.f32 1.0, %v2019_v21  ;;  %v1923_v21 = vunpack.i.h.bf16 %v1921_v62 }
 0x70f   :  { %2032 = vrcp.f32 %v1147_v22  ;;  %v1922_v22 = vunpack.i.l.bf16 %v1921_v62 }
 0x710   :  { %2034 = vrcp.f32 %v1145_v23 }
 0x712   :  { %v2021_v24 = vpop.eup %2020 }
 0x713   :  { %v2023_v25 = vpop.eup %2022  ;;  %v1150_v26 = vadd.f32 1.0, %v2021_v24 }
 0x714   :  { %v2025_v30 = vpop.eup %2024  ;;  %v1148_v49 = vadd.f32 1.0, %v2023_v25 }
 0x715   :  { %v2027_v33 = vpop.eup %2026  ;;  %2036 = vrcp.f32 %v1150_v26  ;;  %v1151_v13 = vadd.f32 1.0, %v2025_v30 }
 0x716   :  { %2038 = vrcp.f32 %v1148_v49  ;;  %v1149_v48 = vadd.f32 1.0, %v2027_v33 }
 0x717   :  { %v2588_v47 = vpop.eup %2028  ;;  %2040 = vrcp.f32 %v1151_v13 }
 0x718   :  { %v2590_v45 = vpop.eup %2030  ;;  %2042 = vrcp.f32 %v1149_v48  ;;  %v1202_v5 = vmul.f32 %v2588_v47, %v1917_v14 }
 0x719   :  { %v2592_v46 = vpop.eup %2032  ;;  %v1200_v17 = vmul.f32 %v2590_v45, %v1912_v15 }
 0x71a   :  { %v2594_v56 = vpop.eup %2034  ;;  %v1203_v57 = vmul.f32 %v2592_v46, %v1918_v40 }
 0x71b   :  { %v1201_v59 = vmul.f32 %v2594_v56, %v1913_v3  ;;  %v1443_v20 = vmul.f32 %v2594_v56, %v823_v63 }
 0x71c   :  { %v1209_v0 = vpack.c.bf16 %v1203_v57, %v1202_v5 }
 0x71d   :  { %v1208_v58 = vpack.c.bf16 %v1201_v59, %v1200_v17 }
 0x71e   :  { %1222 = vrot.lane.b32.xlu1 %v1209_v0, %s2112_s0 }
 0x71f   :  { %v2601_v9 = vpop.eup %2036  ;;  %1220 = vrot.lane.b32.xlu0 %v1208_v58, %s2112_s0 }
 0x720   :  { %v2604_v23 = vpop.eup %2038  ;;  %v1206_v28 = vmul.f32 %v2601_v9, %v1927_v41 }
 0x721   :  { %v2606_v24 = vpop.eup %2040  ;;  %v1204_v30 = vmul.f32 %v2604_v23, %v1922_v22 }
 0x722   :  { %v2608_v25 = vpop.eup %2042  ;;  %v1207_v26 = vmul.f32 %v2606_v24, %v1928_v7  ;;  %v1449_v27 = vmul.f32 %v2606_v24, %v829_v61 }
 0x723   :  { %v1205_v49 = vmul.f32 %v2608_v25, %v1923_v21 }
 0x724   :  { %v1211_v32 = vpack.c.bf16 %v1207_v26, %v1206_v28 }
 0x725   :  { %v1210_v33 = vpack.c.bf16 %v1205_v49, %v1204_v30 }
 0x726   :  { %1226 = vrot.lane.b32.xlu1 %v1211_v32, %s2112_s0 }
 0x727   :  { %1224 = vrot.lane.b32.xlu0 %v1210_v33, %s2112_s0 }
 0x790   :  { %v1223_v48 = vpop.permute.xlu1 %1222 }
 0x791   :  { %v1221_v13 = vpop.permute.xlu0 %1220 }
 0x792   :  { %1841 = vmatprep.mubr.msk.bf16.mxu0 %vm124_vm0, %v1221_v13 }
 0x793   :  { %1842 = vmatmul.mubr.msk.bf16.vlgmr.msra.gmra.mrb[24].mxu0 %vm124_vm0, %v1223_v48 }
 0x798   :  { %v1227_v14 = vpop.permute.xlu1 %1226 }
 0x799   :  { %v1225_v40 = vpop.permute.xlu0 %1224 }
 0x79a   :  { %1845 = vmatprep.mubr.msk.bf16.mxu0 %vm124_vm0, %v1225_v40 }
 0x79b   :  { %1846 = vmatmul.mubr.msk.bf16.gmra.mrb[28].mxu0 %vm124_vm0, %v1227_v14 }
 0x866   :  { %v1843_v3 = vpop.f32.mrb[24].mxu0 }
 0x867   :  { %v1286_v15 = vpop.f32.mrb[25].mxu0 }
 0x868   :  { %v1844_v57 = vpop.f32.mrb[26].mxu0 }
 0x869   :  { %v1318_v5 = vpack.c.bf16 %v1844_v57, %v1843_v3  ;;  %v1289_v17 = vpop.f32.mrb[27].mxu0 }
 0x86a   :  { %v1317_v59 = vpack.c.bf16 %v1289_v17, %v1286_v15 }
 0x86c   :  { %1849 = vmatprep.subr.bf16.mxu1 %v1317_v59 }
 0x86d   :  { %1850 = vmatpush3.bf16.msra.mxu1 %v1317_v59 }
 0x86e   :  { %v1847_v11 = vpop.f32.mrb[28].mxu0  ;;  %1851 = vmatprep.subr.bf16.mxu1 %v1318_v5 }
 0x86f   :  { %v1302_v62 = vpop.f32.mrb[29].mxu0 }
 0x870   :  { %v1848_v0 = vpop.f32.mrb[30].mxu0 }
 0x871   :  { %v1320_v58 = vpack.c.bf16 %v1848_v0, %v1847_v11  ;;  %v1305_v7 = vpop.f32.mrb[31].mxu0  ;;  %1852 = vmatpush3.bf16.msra.mxu1 %v1318_v5 }
 0x872   :  { %v1319_v41 = vpack.c.bf16 %v1305_v7, %v1302_v62 }
 0x874   :  { %1853 = vmatprep.subr.bf16.mxu1 %v1319_v41 }
 0x875   :  { %1854 = vmatpush3.bf16.msra.mxu1 %v1319_v41 }
 0x876   :  { %1855 = vmatprep.subr.bf16.mxu1 %v1320_v58 }
 0x879   :  { %1856 = vmatpush3.bf16.msra.mxu1 %v1320_v58 }
 0x87c   :  { %1858 = vmatmul.mubr.msk.bf16.vlgmr.msra.gmra.mrb[24].mxu1 %vm330_vm2, %v2276_v36 }
 0x87d   :  { %1861 = vmatprep.mubr.msk.bf16.mxu1 %vm330_vm2, %v2281_v37 }
 0x884   :  { %1862 = vmatmul.mubr.msk.bf16.gmra.mrb[28].mxu1 %vm330_vm2, %v2290_v38 }
 0x94f   :  { %v1859_v21 = vpop.f32.mrb[24].mxu1 }
 0x950   :  { %1398 = vrot.lane.b32.xlu0 %v1859_v21, %s2109_s27  ;;  %v1355_v22 = vpop.f32.mrb[25].mxu1 }
 0x951   :  { %v1860_v26 = vpop.f32.mrb[26].mxu1 }
 0x952   :  { %1400 = vrot.lane.b32.xlu1 %v1860_v26, %s2109_s27  ;;  %v1358_v28 = vpop.f32.mrb[27].mxu1 }
 0x954   :  { %1394 = vrot.lane.b32.xlu0 %v1355_v22, %s2109_s27 }
 0x956   :  { %1396 = vrot.lane.b32.xlu1 %v1358_v28, %s2109_s27 }
 0x957   :  { %v1863_v30 = vpop.f32.mrb[28].mxu1 }
 0x958   :  { %v1371_v36 = vpop.f32.mrb[29].mxu1 }
 0x959   :  { %1402 = vrot.lane.b32.xlu0 %v1371_v36, %s2109_s27  ;;  %v1864_v37 = vpop.f32.mrb[30].mxu1 }
 0x95a   :  { %v1374_v49 = vpop.f32.mrb[31].mxu1 }
 0x95b   :  { %1404 = vrot.lane.b32.xlu1 %v1374_v49, %s2109_s27 }
 0x95d   :  { %1406 = vrot.lane.b32.xlu0 %v1863_v30, %s2109_s27 }
 0x95f   :  { %1408 = vrot.lane.b32.xlu1 %v1864_v37, %s2109_s27  ;;  %v1444_v37 = vmul.f32 %v2588_v47, %v824_v18  ;;  %v1451_v18 = vsub.f32 1.0, %v2594_v56  ;;  %v1447_v56 = vmul.f32 %v2608_v25, %v827_v54 }
 0x9c2   :  { %v1399_v38 = vpop.permute.xlu0 %1398 }
 0x9c3   :  { %v1420_v32 = vadd.f32 %v2556_v2, %v1399_v38  ;;  %v1453_v38 = vsub.f32 1.0, %v2592_v46 }
 0x9c4   :  { %v1401_v33 = vpop.permute.xlu1 %1400 }
 0x9c5   :  { %v1428_v13 = vadd.f32 %v2554_v12, %v1420_v32  ;;  %v1421_v48 = vadd.f32 %v2564_v34, %v1401_v33 }
 0x9c6   :  { %v1395_v40 = vpop.permute.xlu0 %1394 }
 0x9c7   :  { %2044 = vtanh.f32 %v1428_v13  ;;  %v1429_v14 = vadd.f32 %v2554_v12, %v1421_v48  ;;  %v1418_v3 = vadd.f32 %v1395_v40, %v2560_v43  ;;  %v1445_v13 = vmul.f32 %v2592_v46, %v825_v6 }
 0x9c8   :  { %v1397_v15 = vpop.permute.xlu1 %1396  ;;  %v1450_v40 = vsub.f32 1.0, %v2590_v45  ;;  %v1454_v46 = vsub.f32 1.0, %v2604_v23 }
 0x9c9   :  { %2046 = vtanh.f32 %v1429_v14  ;;  %v1426_v57 = vadd.f32 %v2554_v12, %v1418_v3  ;;  %v1419_v5 = vadd.f32 %v1397_v15, %v2568_v39  ;;  %v1442_v15 = vmul.f32 %v2590_v45, %v822_v19 }
 0x9ca   :  { %v1446_v45 = vmul.f32 %v2604_v23, %v826_v60  ;;  %v1448_v60 = vmul.f32 %v2601_v9, %v828_v4 }
 0x9cb   :  { %2048 = vtanh.f32 %v1426_v57  ;;  %v1427_v2 = vadd.f32 %v2554_v12, %v1419_v5  ;;  %v1403_v17 = vpop.permute.xlu0 %1402 }
 0x9cc   :  { %v1422_v59 = vadd.f32 %v1403_v17, %v2576_v53 }
 0x9cd   :  { %2050 = vtanh.f32 %v1427_v2  ;;  %v1405_v34 = vpop.permute.xlu1 %1404 }
 0x9ce   :  { %v1430_v11 = vadd.f32 %v2554_v12, %v1422_v59  ;;  %v1423_v62 = vadd.f32 %v1405_v34, %v2584_v16  ;;  %v1455_v59 = vsub.f32 1.0, %v2608_v25 }
 0x9cf   :  { %v1407_v0 = vpop.permute.xlu0 %1406 }
 0x9d0   :  { %2052 = vtanh.f32 %v1430_v11  ;;  %v1431_v43 = vadd.f32 %v2554_v12, %v1423_v62  ;;  %v1424_v58 = vadd.f32 %v2572_v50, %v1407_v0  ;;  %v1456_v11 = vsub.f32 1.0, %v2601_v9 }
 0x9d1   :  { %v2045_v7 = vpop.eup %2044  ;;  %v1409_v39 = vpop.permute.xlu1 %1408 }
 0x9d2   :  { %2054 = vtanh.f32 %v1431_v43  ;;  %v1432_v41 = vadd.f32 %v2554_v12, %v1424_v58  ;;  %v1425_v21 = vadd.f32 %v2580_v55, %v1409_v39  ;;  %1470 = vrot.lane.b32.xlu0 %v2045_v7, %s2109_s27  ;;  %v1457_v43 = vsub.f32 1.0, %v2606_v24 }
 0x9d3   :  { %v2047_v53 = vpop.eup %2046 }
 0x9d4   :  { %2056 = vtanh.f32 %v1432_v41  ;;  %v1433_v22 = vadd.f32 %v2554_v12, %v1425_v21  ;;  %1472 = vrot.lane.b32.xlu1 %v2047_v53, %s2109_s27  ;;  %v1452_v12 = vsub.f32 1.0, %v2588_v47 }
 0x9d5   :  { %v2049_v16 = vpop.eup %2048 }
 0x9d6   :  { %2058 = vtanh.f32 %v1433_v22  ;;  %1466 = vrot.lane.b32.xlu0 %v2049_v16, %s2109_s27 }
 0x9d7   :  { %v2051_v50 = vpop.eup %2050 }
 0x9d8   :  { %1468 = vrot.lane.b32.xlu1 %v2051_v50, %s2109_s27 }
 0x9da   :  { %v2053_v26 = vpop.eup %2052 }
 0x9db   :  { %1474 = vrot.lane.b32.xlu0 %v2053_v26, %s2109_s27 }
 0x9dc   :  { %v2055_v28 = vpop.eup %2054 }
 0x9dd   :  { %1476 = vrot.lane.b32.xlu1 %v2055_v28, %s2109_s27 }
 0x9de   :  { %v2057_v55 = vpop.eup %2056 }
 0x9df   :  { %1478 = vrot.lane.b32.xlu0 %v2057_v55, %s2109_s27 }
 0x9e0   :  { %v2059_v30 = vpop.eup %2058 }
 0x9e1   :  { %1480 = vrot.lane.b32.xlu1 %v2059_v30, %s2109_s27  ;;  %s2082_s27 = scalar_lea.vmem %s1560_s10, 1024 }
 0x9e2   :  { %p2083_p8 = scmp.ne.s32.totalorder %s1560_s10, %s2082_s27  ;;  %p2088_p10 = scmp.lt.s32.totalorder %s2082_s27, %s2082_s27 }
 0x9e4   :  { %p2089_p11 = por %p2088_p10, %p2087_p9 }
 0x9e6   :  { %p2090_p12 = pnand %p2089_p11, %p2083_p8 }
 0xa44   :  { %v1471_v36 = vpop.permute.xlu0 %1470 }
 0xa45   :  { %v1492_v49 = vmul.f32 %v1471_v36, %v1452_v12 }
 0xa46   :  { %v1473_v32 = vpop.permute.xlu1 %1472 }
 0xa47   :  { %v1500_v33 = vadd.f32 %v1492_v49, %v1444_v37  ;;  %v1493_v48 = vmul.f32 %v1473_v32, %v1453_v38 }
 0xa48   :  { %v1467_v14 = vpop.permute.xlu0 %1466 }
 0xa49   :  { %v1501_v3 = vadd.f32 %v1493_v48, %v1445_v13  ;;  %v1490_v57 = vmul.f32 %v1467_v14, %v1450_v40  ;;  %1518 = vrot.lane.b32.xlu0 %v1500_v33, %s2111_s1 }
 0xa4a   :  { %v1469_v47 = vpop.permute.xlu1 %1468 }
 0xa4b   :  { %v1498_v5 = vadd.f32 %v1490_v57, %v1442_v15  ;;  %v1491_v6 = vmul.f32 %v1469_v47, %v1451_v18  ;;  %1520 = vrot.lane.b32.xlu1 %v1501_v3, %s2111_s1 }
 0xa4d   :  { %v1499_v2 = vadd.f32 %v1491_v6, %v1443_v20  ;;  %1514 = vrot.lane.b32.xlu0 %v1498_v5, %s2111_s1  ;;  %v1475_v19 = vpop.permute.xlu0 %1474 }
 0xa4e   :  { %v1494_v17 = vmul.f32 %v1475_v19, %v1454_v46 }
 0xa4f   :  { %1516 = vrot.lane.b32.xlu1 %v1499_v2, %s2111_s1  ;;  %v1477_v10 = vpop.permute.xlu1 %1476 }
 0xa50   :  { %v1502_v63 = vadd.f32 %v1494_v17, %v1446_v45  ;;  %v1495_v34 = vmul.f32 %v1477_v10, %v1455_v59 }
 0xa51   :  { %v1479_v62 = vpop.permute.xlu0 %1478 }
 0xa52   :  { %v1503_v0 = vadd.f32 %v1495_v34, %v1447_v56  ;;  %v1496_v23 = vmul.f32 %v1479_v62, %v1456_v11  ;;  %1522 = vrot.lane.b32.xlu0 %v1502_v63, %s2111_s1 }
 0xa53   :  { %v1481_v58 = vpop.permute.xlu1 %1480 }
 0xa54   :  { %v1504_v7 = vadd.f32 %v1496_v23, %v1448_v60  ;;  %v1497_v54 = vmul.f32 %v1481_v58, %v1457_v43  ;;  %1524 = vrot.lane.b32.xlu1 %v1503_v0, %s2111_s1 }
 0xa56   :  { %v1505_v25 = vadd.f32 %v1497_v54, %v1449_v27  ;;  %1526 = vrot.lane.b32.xlu0 %v1504_v7, %s2111_s1 }
 0xa58   :  { %1528 = vrot.lane.b32.xlu1 %v1505_v25, %s2111_s1 }
 0xabb   :  { %v1519_v4 = vpop.permute.xlu0 %1518 }
 0xabc   :  { %v1540_v9 = vsel %vm124_vm0, %v2472_v35, %v1519_v4 }
 0xabd   :  { %1548 = vst.msk [vmem:[#allocation5 + $0x10] sm:$0xff] %vm330_vm2, %v1540_v9  ;;  %v1521_v39 = vpop.permute.xlu1 %1520 }
 0xabe   :  { %v1541_v29 = vsel %vm124_vm0, %v2474_v42, %v1521_v39 }
 0xabf   :  { %1549 = vst.msk [vmem:[#allocation5 + $0x18] sm:$0xff] %vm330_vm2, %v1541_v29  ;;  %v1515_v61 = vpop.permute.xlu0 %1514 }
 0xac0   :  { %v1538_v24 = vsel %vm124_vm0, %v2458_v44, %v1515_v61 }
 0xac1   :  { %1546 = vst.msk [vmem:[#allocation5] sm:$0xff] %vm330_vm2, %v1538_v24  ;;  %v1517_v41 = vpop.permute.xlu1 %1516 }
 0xac2   :  { %v1539_v21 = vsel %vm124_vm0, %v2460_v31, %v1517_v41 }
 0xac3   :  { %1547 = vst.msk [vmem:[#allocation5 + $0x8] sm:$0xff] %vm330_vm2, %v1539_v21 }
 0xac4   :  { %v1523_v35 = vpop.permute.xlu0 %1522 }
 0xac5   :  { %v1542_v53 = vsel %vm124_vm0, %v2487_v51, %v1523_v35 }
 0xac6   :  { %1550 = vst.msk [vmem:[#allocation5 + $0x20] sm:$0xff] %vm330_vm2, %v1542_v53  ;;  %v1525_v42 = vpop.permute.xlu1 %1524 }
 0xac7   :  { %v1543_v44 = vsel %vm124_vm0, %v2489_v52, %v1525_v42 }
 0xac8   :  { %1551 = vst.msk [vmem:[#allocation5 + $0x28] sm:$0xff] %vm330_vm2, %v1543_v44  ;;  %v1527_v22 = vpop.permute.xlu0 %1526 }
 0xac9   :  { %v1544_v31 = vsel %vm124_vm0, %v2501_v1, %v1527_v22 }
 0xaca   :  { %1552 = vst.msk [vmem:[#allocation5 + $0x30] sm:$0xff] %vm330_vm2, %v1544_v31  ;;  %v1529_v16 = vpop.permute.xlu1 %1528 }
 0xacb   :  { %v1545_v51 = vsel %vm124_vm0, %v2503_v8, %v1529_v16 }
 0xacc   :  { %1553 = vst.msk [vmem:[#allocation5 + $0x38] sm:$0xff] %vm330_vm2, %v1545_v51 }
 0xacd   :  { %2093 = shalt.err (!%p2090_p12)
}
 0xace   :  { %s2094_s22 = scalar_lea.hbm %s2745_s11, 1024 }
 0xacf   :  { %p2095_p13 = scmp.ne.s32.totalorder %s2745_s11, %s2094_s22  ;;  %p2098_p0 = scmp.lt.u32.totalorder %s2094_s22, %s2745_s11 }
 0xad1   :  { %p2100_p1 = pnand %p2098_p0, %p2095_p13 }
 0xad3   :  { %2103 = shalt.err (!%p2100_p1)
}
 0xad4   :  { %s2114_s24 = smov 128   ;;  %s2115_s25 = smov 8  }
 0xad5   :  { %1565 = dma.vmem_to_hbm [thread:$0]  %s1560_s10, 1024, %s2745_s11, [#allocation4], %s2114_s24, %s2114_s24, %s2115_s25  }
 0xad6   :  { %2106 = dma.done.wait [#allocation4], 1024  }
 0xad7   :  { %2107 = vsyncadd [#allocation4], 4294966272 }
 0xad8   :  { %1569 = vsyncpa [#allocation3], 1 }
 0xad9   :  { %1570 = vsyncpa [#allocation4], 1 }

</bundles_post_ra>
